<compile_context>
chip_gen: v5e
topology: v5e:2x2
jax: 0.10.0
libtpu: 0.0.40
codegen_flags: <defaults>
</compile_context>

<pallas_src>
import functools

import jax
import jax.numpy as jnp
from jax.experimental import pallas as pl
from jax.experimental.pallas import tpu as pltpu

_LANE = 128


def _proto_loss_kernel(thresh_ref, x_ref, gt_ref, ent_ref, w_ref, out_ref, *, inv_t):
    """One (batch, chunk, spatial-tile) step; lane-dense (K, TILE) math."""
    j = pl.program_id(2)

    @pl.when(j == 0)
    def _():
        out_ref[...] = jnp.zeros_like(out_ref)

    x = x_ref[0]                                               # (C, TILE) native dtype
    w = w_ref[...]                                             # (K, C), same dtype as x

    # cosine^T = W_norm @ x on the MXU; x feeds the MXU unconverted (bf16-native),
    # accumulation in f32 -- no whole-slab f32 cast / extra VMEM copy.
    cos = jnp.dot(w, x, preferred_element_type=jnp.float32)    # (K, TILE) f32

    # F.normalize(x, p=2, dim=-1, eps=1e-12) folded in post-matmul:
    # 1/max(||x||, 1e-12) == rsqrt(max(ssq, 1e-24)).  The f32 upcast fuses per-vreg
    # into the reduction.
    xf = x.astype(jnp.float32)
    ssq = jnp.sum(xf * xf, axis=0, keepdims=True)              # (1, TILE)
    inv_norm = jax.lax.rsqrt(jnp.maximum(ssq, 1e-24))          # (1, TILE)  EUP

    # entropy threshold mask (torch.le(entropy, thresh)); fused with the norm scale.
    mask = (ent_ref[0] <= thresh_ref[0]).astype(jnp.float32)   # (1, TILE)
    cos = cos * (inv_norm * mask)                              # broadcast over K rows

    # positive logit: cosine[gt[col], col] via sublane one-hot select + K-reduce.
    # TODO(synk): gt values >= num_classes (e.g. ignore label 255) give pos_cos = 0
    # here, whereas PyTorch's gather would be out-of-bounds.
    gt = gt_ref[0]                                             # (1, TILE) int32
    row = jax.lax.broadcasted_iota(jnp.int32, cos.shape, 0)    # (K, TILE)
    pos_cos = jnp.sum(jnp.where(row == gt, cos, 0.0),
                      axis=0, keepdims=True)                   # (1, TILE)

    positive = jnp.exp(pos_cos * inv_t)                        # (1, TILE)
    # NOTE: reference is torch.sum(torch.exp(cosine) / t, -1) (exp THEN divide) --
    # reproduced exactly (t constant => sum(exp) * (1/t)).
    # TODO(synk): at large num_classes the (K, TILE) exp may saturate the EUP slot;
    # on v6e/v7x a bf16 exp (with f32 K-reduce) roughly doubles EUP throughput.
    sum_all = jnp.sum(jnp.exp(cos), axis=0, keepdims=True) * inv_t   # (1, TILE)

    row_loss = jnp.log(positive * pl.reciprocal(sum_all + 1e-7, approx=True) + 1e-7)

    # lane-wise partial-sum accumulation into the resident per-(batch,chunk) output
    # block (no per-step cross-lane reduce, no narrow masked stores).
    out_ref[...] += row_loss.reshape(1, 1, -1)                 # (1, 1, TILE)


def _pick_spatial_tile(HW, x_bytes_per_pixel, target_block_bytes, vmem_budget_bytes,
                       resident_bytes):
    """Largest spatial tile (multiple of 128, divisor of HW) whose x block is
    ~target_block_bytes and whose double-buffered streams fit the VMEM budget."""
    per_pixel_vmem = 2 * x_bytes_per_pixel + 24   # 2x x-block + gt/ent/out (f32, 2x)
    tile_target = target_block_bytes // max(x_bytes_per_pixel, 1)
    tile_vmem = max(vmem_budget_bytes - resident_bytes, 0) // per_pixel_vmem
    cap = min(tile_target, tile_vmem, HW)
    cap = max(_LANE, (cap // _LANE) * _LANE)
    t = cap
    while t > _LANE and HW % t != 0:
        t -= _LANE
    return t


def stable_temperatured_prototype_loss(x, gt, percent, entropy, weight,
                                       *, t=0.1, orthogonal_reg_weight=0.0,
                                       target_block_bytes=2 * 1024 * 1024,
                                       vmem_budget_bytes=40 * 1024 * 1024):
    """JAX/Pallas implementation of StableTemperaturedPrototypeLoss.forward.

    x       : (B, C, H, W) features (NCHW); bf16 halves the dominant HBM stream and
              feeds the MXU natively (f32 accumulation in-kernel).
    gt      : (B, 1, H, W) or (B, H, W) integer labels, same spatial size as x.
    percent : python float percentile for the entropy threshold.
    entropy : any shape reshapable to (B, H*W) in (b, h, w) order.
    weight  : (num_classes, C) prototype embedding matrix.
    """
    B, C, H, W = x.shape
    HW = H * W
    N = B * HW
    K = weight.shape[0]

    assert HW % _LANE == 0, "H*W must be a multiple of 128"

    x_itemsize = jnp.dtype(x.dtype).itemsize
    resident_bytes = 2 * K * C * x_itemsize + (64 << 10)   # prototypes (2 bufs) + slack
    tile_hw = _pick_spatial_tile(HW, C * x_itemsize, target_block_bytes,
                                 vmem_budget_bytes, resident_bytes)
    n_sp = HW // tile_hw

    # v7x: if the batch axis alone cannot feed both TensorCores, split the spatial
    # tiles into an extra leading *parallel* chunk axis, each with its own partial
    # output block (the wrapper sums partials anyway).  No-op on v5e/v6e and B >= 2.
    n_par = 2 if (B == 1 and n_sp % 2 == 0) else 1
    n_inner = n_sp // n_par

    # ---- glue: NCHW consumed directly; these reshapes are free ---------------------
    x3 = x.reshape(B, C, HW)                                   # keep native dtype
    gt3 = gt.reshape(B, 1, HW).astype(jnp.int32)
    ent3 = entropy.reshape(B, 1, HW).astype(jnp.float32)
    # TODO(synk): gt could stream as int16/int8 and entropy as bf16 to shave a few %
    # of HBM bytes; kept int32/f32 so the threshold mask matches the reference exactly.

    # ---- glue: l2-normalize prototype matrix (K, C) and cast to x's dtype ----------
    wf = weight.astype(jnp.float32)
    w_norm = (wf / jnp.maximum(
        jnp.sqrt(jnp.sum(wf * wf, axis=-1, keepdims=True)), 1e-12)).astype(x.dtype)

    # ---- glue: percentile threshold (np.percentile-style linear interpolation) -----
    # TODO(synk): jnp.percentile is a full O(N log N) sort plus an extra HBM pass; a
    # two-pass histogram quantile (or a cached/less-frequent threshold) removes it at
    # large N.
    thresh = jnp.percentile(ent3.reshape(-1), percent).reshape(1).astype(jnp.float32)

    # VMEM actually needed (double-buffered streams + resident prototypes); raise the
    # scoped limit past v5e's 16 MiB default, stay well under v7x's 64 MiB physical.
    needed = (2 * C * x_itemsize + 24) * tile_hw + resident_bytes
    vmem_limit = int(min(48 << 20, max(32 << 20, 2 * needed)))

    partials = pl.pallas_call(
        functools.partial(_proto_loss_kernel, inv_t=1.0 / t),
        out_shape=jax.ShapeDtypeStruct((B * n_par, 1, tile_hw), jnp.float32),
        grid_spec=pltpu.PrefetchScalarGridSpec(
            num_scalar_prefetch=1,                                  # thresh -> SMEM
            grid=(B, n_par, n_inner),
            in_specs=[
                pl.BlockSpec((1, C, tile_hw),
                             lambda b, p, j, th: (b, 0, p * n_inner + j)),   # x (NCHW slab)
                pl.BlockSpec((1, 1, tile_hw),
                             lambda b, p, j, th: (b, 0, p * n_inner + j)),   # gt
                pl.BlockSpec((1, 1, tile_hw),
                             lambda b, p, j, th: (b, 0, p * n_inner + j)),   # entropy
                pl.BlockSpec((K, C), lambda b, p, j, th: (0, 0)),            # prototypes
            ],
            out_specs=pl.BlockSpec((1, 1, tile_hw),
                                   lambda b, p, j, th: (b * n_par + p, 0, 0)),
        ),
        compiler_params=pltpu.CompilerParams(
            dimension_semantics=("parallel", "parallel", "arbitrary"),
            vmem_limit_bytes=vmem_limit),
    )(thresh, x3, gt3, ent3, w_norm)

    loss = -jnp.sum(partials) / N

    if orthogonal_reg_weight > 0:
        # tiny (K, K) -- plain JAX
        wn = w_norm.astype(jnp.float32)
        cs = wn @ wn.T
        ortho = jnp.sum(cs ** 2) / (K ** 2) - 1.0 / K
        loss = loss + orthogonal_reg_weight * ortho
    return loss


def _reference(x, gt, percent, entropy, weight, *, t=0.1):
    """Pure-JAX reference reproducing the PyTorch forward (init='normal' path)."""
    B, C, H, W = x.shape
    N = B * H * W
    fx = jnp.transpose(x, (0, 2, 3, 1)).reshape(N, C).astype(jnp.float32)
    fg = gt.reshape(N).astype(jnp.int32)
    fe = entropy.reshape(N).astype(jnp.float32)
    w = weight.astype(jnp.float32)
    w = w / jnp.maximum(jnp.sqrt(jnp.sum(w * w, axis=-1, keepdims=True)), 1e-12)
    fx = fx / jnp.maximum(jnp.sqrt(jnp.sum(fx * fx, axis=-1, keepdims=True)), 1e-12)
    cosine = fx @ w.T
    thresh = jnp.percentile(fe, percent)
    mask = (fe <= thresh).astype(jnp.float32)
    cosine = cosine * mask[:, None]
    positive = jnp.exp(cosine[jnp.arange(N), fg] / t)
    sum_all = jnp.sum(jnp.exp(cosine) / t, axis=-1)
    return -jnp.mean(jnp.log(positive / (sum_all + 1e-7) + 1e-7))


if __name__ == "__main__":
    # Small shapes: batch=2, embedding_dim=32, spatial=16x16, num_classes=8
    B, C, H, W = 2, 32, 16, 16
    num_classes = 8
    percent = 80.0

    key = jax.random.PRNGKey(0)
    kx, kg, ke, kw = jax.random.split(key, 4)

    x = jax.random.normal(kx, (B, C, H, W), dtype=jnp.float32)
    gt = jax.random.randint(kg, (B, 1, H, W), 0, num_classes, dtype=jnp.int32)
    entropy = jax.random.uniform(ke, (B, H, W), dtype=jnp.float32)
    # init='normal': embedding.weight ~ N(0, 1), deterministic via fixed key
    weight = jax.random.normal(kw, (num_classes, C), dtype=jnp.float32)

    ref = jax.block_until_ready(_reference(x, gt, percent, entropy, weight, t=0.1))

    # f32 path: matches the PyTorch reference closely.
    loss = jax.block_until_ready(
        stable_temperatured_prototype_loss(x, gt, percent, entropy, weight, t=0.1))
    if not abs(float(loss) - float(ref)) <= 1e-2 * (1.0 + abs(float(ref))):
        raise AssertionError(f"f32 mismatch: kernel={float(loss)} ref={float(ref)}")

    # bf16 streaming path: halves the dominant HBM stream, MXU takes bf16 natively.
    loss_bf16 = jax.block_until_ready(
        stable_temperatured_prototype_loss(
            x.astype(jnp.bfloat16), gt, percent, entropy,
            weight.astype(jnp.bfloat16), t=0.1))
    if not (bool(jnp.isfinite(loss_bf16)) and
            abs(float(loss_bf16) - float(ref)) <= 1e-1 * (1.0 + abs(float(ref)))):
        raise AssertionError(f"bf16 mismatch: kernel={float(loss_bf16)} ref={float(ref)}")

    print("KERNEL_OK")
</pallas_src>

<mosaic_0001>
module attributes {stable_mosaic.version = 11 : i64} {
  func.func @_proto_loss_kernel(%arg0: i32, %arg1: i32, %arg2: i32, %arg3: memref<1xf32, #tpu.memory_space<smem>>, %arg4: memref<1x32x256xf32, #tpu.memory_space<vmem>>, %arg5: memref<1x1x256xi32, #tpu.memory_space<vmem>>, %arg6: memref<1x1x256xf32, #tpu.memory_space<vmem>>, %arg7: memref<8x32xf32, #tpu.memory_space<vmem>>, %arg8: memref<1x1x256xf32, #tpu.memory_space<vmem>>) attributes {dimension_semantics = [#tpu.dimension_semantics<parallel>, #tpu.dimension_semantics<parallel>, #tpu.dimension_semantics<arbitrary>], iteration_bounds = array<i64: 2, 1, 1>, scalar_prefetch = 1 : i64, scratch_operands = 0 : i64, tpu.core_type = #tpu.core_type<tc>, window_params = [{transform_indices = @transform_0, window_bounds = array<i64: 1, 32, 256>}, {transform_indices = @transform_1, window_bounds = array<i64: 1, 1, 256>}, {transform_indices = @transform_2, window_bounds = array<i64: 1, 1, 256>}, {pipeline_mode = #tpu.pipeline_mode<synchronous>, transform_indices = @transform_3, window_bounds = array<i64: 8, 32>}, {transform_indices = @transform_4, window_bounds = array<i64: 1, 1, 256>}]} {
    %c0_i32 = arith.constant 0 : i32
    %0 = arith.cmpi eq, %arg2, %c0_i32 : i32
    %1 = arith.extui %0 : i1 to i32
    %c0_i32_0 = arith.constant 0 : i32
    %2 = arith.cmpi ne, %1, %c0_i32_0 : i32
    scf.if %2 {
      %cst_27 = arith.constant 0.000000e+00 : f32
      %51 = vector.broadcast %cst_27 : f32 to vector<1x1x256xf32>
      %c0_28 = arith.constant 0 : index
      %c0_29 = arith.constant 0 : index
      %c0_30 = arith.constant 0 : index
      %52 = vector.load %arg8[%c0_28, %c0_29, %c0_30] : memref<1x1x256xf32, #tpu.memory_space<vmem>>, vector<1x1x256xf32>
      tpu.vector_store %arg8[%c0_28, %c0_29, %c0_30], %51 {strides = array<i32>} : memref<1x1x256xf32, #tpu.memory_space<vmem>>, vector<1x1x256xf32>,
    } else {
    }
    %c0 = arith.constant 0 : index
    %c0_1 = arith.constant 0 : index
    %c0_2 = arith.constant 0 : index
    %3 = vector.load %arg4[%c0, %c0_1, %c0_2] : memref<1x32x256xf32, #tpu.memory_space<vmem>>, vector<1x32x256xf32>
    %4 = vector.shape_cast %3 : vector<1x32x256xf32> to vector<32x256xf32>
    %c0_3 = arith.constant 0 : index
    %c0_4 = arith.constant 0 : index
    %5 = vector.load %arg7[%c0_3, %c0_4] : memref<8x32xf32, #tpu.memory_space<vmem>>, vector<8x32xf32>
    %cst = arith.constant dense<0.000000e+00> : vector<8x256xf32>
    %6 = tpu.matmul %5, %4, %cst {dimension_numbers = #tpu.dot_dimension_numbers<[1], [0], [0], [1], [0, 0, 1, 1], [], []>} : vector<8x32xf32>, vector<32x256xf32>, vector<8x256xf32> -> vector<8x256xf32>
    %7 = arith.mulf %4, %4 : vector<32x256xf32>
    %cst_5 = arith.constant dense<0.000000e+00> : vector<256xf32>
    %8 = vector.multi_reduction <add>, %7, %cst_5 [0] : vector<32x256xf32> to vector<256xf32>
    %9 = vector.shape_cast %8 : vector<256xf32> to vector<1x256xf32>
    %cst_6 = arith.constant 1.000000e-24 : f32
    %10 = vector.broadcast %cst_6 : f32 to vector<1x256xf32>
    %11 = arith.maximumf %9, %10 : vector<1x256xf32>
    %12 = math.rsqrt %11 : vector<1x256xf32>
    %c0_7 = arith.constant 0 : index
    %c0_8 = arith.constant 0 : index
    %c0_9 = arith.constant 0 : index
    %13 = vector.load %arg6[%c0_7, %c0_8, %c0_9] : memref<1x1x256xf32, #tpu.memory_space<vmem>>, vector<1x1x256xf32>
    %14 = vector.shape_cast %13 : vector<1x1x256xf32> to vector<1x256xf32>
    %c0_10 = arith.constant 0 : index
    %15 = memref.load %arg3[%c0_10] : memref<1xf32, #tpu.memory_space<smem>>
    %16 = vector.broadcast %15 : f32 to vector<1x256xf32>
    %17 = arith.cmpf ole, %14, %16 : vector<1x256xf32>
    %18 = arith.extui %17 : vector<1x256xi1> to vector<1x256xi32>
    %19 = arith.sitofp %18 : vector<1x256xi32> to vector<1x256xf32>
    %20 = arith.mulf %12, %19 : vector<1x256xf32>
    %21 = vector.broadcast %20 : vector<1x256xf32> to vector<8x256xf32>
    %22 = arith.mulf %6, %21 : vector<8x256xf32>
    %c0_11 = arith.constant 0 : index
    %c0_12 = arith.constant 0 : index
    %c0_13 = arith.constant 0 : index
    %23 = vector.load %arg5[%c0_11, %c0_12, %c0_13] : memref<1x1x256xi32, #tpu.memory_space<vmem>>, vector<1x1x256xi32>
    %24 = vector.shape_cast %23 : vector<1x1x256xi32> to vector<1x256xi32>
    %25 = tpu.iota {dimensions = array<i32: 0>} : vector<8x256xi32>
    %26 = vector.broadcast %24 : vector<1x256xi32> to vector<8x256xi32>
    %27 = arith.cmpi eq, %25, %26 : vector<8x256xi32>
    %cst_14 = arith.constant 0.000000e+00 : f32
    %28 = vector.broadcast %cst_14 : f32 to vector<8x256xf32>
    %29 = arith.select %27, %22, %28 : vector<8x256xi1>, vector<8x256xf32>
    %cst_15 = arith.constant dense<0.000000e+00> : vector<256xf32>
    %30 = vector.multi_reduction <add>, %29, %cst_15 [0] : vector<8x256xf32> to vector<256xf32>
    %31 = vector.shape_cast %30 : vector<256xf32> to vector<1x256xf32>
    %cst_16 = arith.constant 1.000000e+01 : f32
    %32 = vector.broadcast %cst_16 : f32 to vector<1x256xf32>
    %33 = arith.mulf %31, %32 : vector<1x256xf32>
    %34 = math.exp %33 : vector<1x256xf32>
    %35 = math.exp %22 : vector<8x256xf32>
    %cst_17 = arith.constant dense<0.000000e+00> : vector<256xf32>
    %36 = vector.multi_reduction <add>, %35, %cst_17 [0] : vector<8x256xf32> to vector<256xf32>
    %37 = vector.shape_cast %36 : vector<256xf32> to vector<1x256xf32>
    %cst_18 = arith.constant 1.000000e+01 : f32
    %38 = vector.broadcast %cst_18 : f32 to vector<1x256xf32>
    %39 = arith.mulf %37, %38 : vector<1x256xf32>
    %cst_19 = arith.constant 1.000000e-07 : f32
    %40 = vector.broadcast %cst_19 : f32 to vector<1x256xf32>
    %41 = arith.addf %39, %40 : vector<1x256xf32>
    %42 = tpu.reciprocal %41 {approx = true} : vector<1x256xf32> -> vector<1x256xf32>
    %43 = arith.mulf %34, %42 : vector<1x256xf32>
    %cst_20 = arith.constant 1.000000e-07 : f32
    %44 = vector.broadcast %cst_20 : f32 to vector<1x256xf32>
    %45 = arith.addf %43, %44 : vector<1x256xf32>
    %46 = math.log %45 : vector<1x256xf32>
    %c0_21 = arith.constant 0 : index
    %c0_22 = arith.constant 0 : index
    %c0_23 = arith.constant 0 : index
    %47 = vector.load %arg8[%c0_21, %c0_22, %c0_23] : memref<1x1x256xf32, #tpu.memory_space<vmem>>, vector<1x1x256xf32>
    %48 = vector.shape_cast %46 : vector<1x256xf32> to vector<1x1x256xf32>
    %49 = arith.addf %47, %48 : vector<1x1x256xf32>
    %c0_24 = arith.constant 0 : index
    %c0_25 = arith.constant 0 : index
    %c0_26 = arith.constant 0 : index
    %50 = vector.load %arg8[%c0_24, %c0_25, %c0_26] : memref<1x1x256xf32, #tpu.memory_space<vmem>>, vector<1x1x256xf32>
    tpu.vector_store %arg8[%c0_24, %c0_25, %c0_26], %49 {strides = array<i32>} : memref<1x1x256xf32, #tpu.memory_space<vmem>>, vector<1x1x256xf32>,
    return
  }
  func.func @transform_0(%arg0: i32, %arg1: i32, %arg2: i32, %arg3: memref<1xf32, #tpu.memory_space<smem>>) -> (i32, i32, i32) {
    %c1_i32 = arith.constant 1 : i32
    %0 = arith.muli %arg1, %c1_i32 : i32
    %1 = arith.addi %0, %arg2 : i32
    %c0_i32 = arith.constant 0 : i32
    %c0_i32_0 = arith.constant 0 : i32
    return %arg0, %c0_i32, %1 : i32, i32, i32
  }
  func.func @transform_1(%arg0: i32, %arg1: i32, %arg2: i32, %arg3: memref<1xf32, #tpu.memory_space<smem>>) -> (i32, i32, i32) {
    %c1_i32 = arith.constant 1 : i32
    %0 = arith.muli %arg1, %c1_i32 : i32
    %1 = arith.addi %0, %arg2 : i32
    %c0_i32 = arith.constant 0 : i32
    %c0_i32_0 = arith.constant 0 : i32
    return %arg0, %c0_i32, %1 : i32, i32, i32
  }
  func.func @transform_2(%arg0: i32, %arg1: i32, %arg2: i32, %arg3: memref<1xf32, #tpu.memory_space<smem>>) -> (i32, i32, i32) {
    %c1_i32 = arith.constant 1 : i32
    %0 = arith.muli %arg1, %c1_i32 : i32
    %1 = arith.addi %0, %arg2 : i32
    %c0_i32 = arith.constant 0 : i32
    %c0_i32_0 = arith.constant 0 : i32
    return %arg0, %c0_i32, %1 : i32, i32, i32
  }
  func.func @transform_3(%arg0: i32, %arg1: i32, %arg2: i32, %arg3: memref<1xf32, #tpu.memory_space<smem>>) -> (i32, i32) {
    %c0_i32 = arith.constant 0 : i32
    %c0_i32_0 = arith.constant 0 : i32
    %c0_i32_1 = arith.constant 0 : i32
    return %c0_i32, %c0_i32_0 : i32, i32
  }
  func.func @transform_4(%arg0: i32, %arg1: i32, %arg2: i32, %arg3: memref<1xf32, #tpu.memory_space<smem>>) -> (i32, i32, i32) {
    %c1_i32 = arith.constant 1 : i32
    %0 = arith.muli %arg0, %c1_i32 : i32
    %1 = arith.addi %0, %arg1 : i32
    %c0_i32 = arith.constant 0 : i32
    %c0_i32_0 = arith.constant 0 : i32
    %c0_i32_1 = arith.constant 0 : i32
    return %1, %c0_i32, %c0_i32_0 : i32, i32, i32
  }
}

</mosaic_0001>

<bundles_post_ra>
// kernel: tpu_custom_call.1
= control target key start
LH: loop header
LB: loop body
LE: loop exit
PB: predicated region body
PF: predicated region fallthrough
CT: control target
= control target key end

     0   :  { %s1305_s0 = inlined_call_operand.<no memory space> [shape: f32[1], index: 0, kind: input, shape index: {}]   ;;  %s1306_s1 = inlined_call_operand.hbm [shape: f32[2,32,256], index: 1, kind: input, shape index: {}]   ;;  %s1307_s2 = inlined_call_operand.hbm [shape: s32[2,1,256], index: 2, kind: input, shape index: {}]   ;;  %s1308_s3 = inlined_call_operand.hbm [shape: f32[2,1,256], index: 3, kind: input, shape index: {}]   ;;  %s1309_s4 = inlined_call_operand.hbm [shape: f32[8,32], index: 4, kind: input, shape index: {}]   ;;  %s1310_s5 = inlined_call_operand.hbm [shape: f32[2,1,256], index: 5, kind: output, shape index: {}]  }
   0x1   :  { %1315 = sst [smem:[#allocation21_spill]] %s1307_s2 }
   0x2   :  { %1316 = sst [smem:[#allocation22_spill]] %s1308_s3 }
   0x3   :  { %1317 = sst [smem:[#allocation23_spill]] %s1309_s4 }
   0x4   :  { %10 = sst [smem:[#allocation3]] %s1305_s0 }
   0x5   :  { %11 = vsyncpa [#allocation5], 0 }
   0x6   :  { %13 = vsyncpa [#allocation5 + $0x1], 0 }
   0x7   :  { %14 = vsyncpa [#allocation8], 0 }
   0x8   :  { %16 = vsyncpa [#allocation8 + $0x1], 0 }
   0x9   :  { %17 = vsyncpa [#allocation11], 0 }
   0xa   :  { %18 = vsyncpa [#allocation6], 0 }
   0xb   :  { %20 = vsyncpa [#allocation6 + $0x1], 0  ;;  %s1099_s20 = smov 0   ;;  %s1101_s21 = smov 0  }
   0xc   :  { %s1103_s22 = smov 0   ;;  %s1105_s23 = smov 0  }
   0xd   :  { %s1107_s24 = smov 0   ;;  %s1109_s25 = smov 0  }
   0xe LB: > { %1318 = sst [smem:[#allocation17_spill]] %s1048_s22  ;;  %s45_s0 = sadd.s32 1, %s1056_s24  ;;  %s1060_s25 = sphi %s1109_s25, %s26_s25   ;;  %s1056_s24 = sphi %s1107_s24, %s1336_s24   ;;  %s1052_s23 = sphi %s1105_s23, %s1335_s23   ;;  %s1048_s22 = sphi %s1103_s22, %s1334_s22   ;;  %s1044_s21 = sphi %s1101_s21, %s1338_s21   ;;  %s1040_s20 = sphi %s1099_s20, %s1337_s20  }
   0xf   : > { %1319 = sst [smem:[#allocation18_spill]] %s1056_s24  ;;  %s56_s26 = sadd.s32 1, %s1048_s22 }
  0x10   : > { %p47_p0 = scmp.ge.s32.totalorder %s45_s0, 2  ;;  %p63_p1 = scmp.ne.s32.totalorder %s1048_s22, %s1044_s21 }
  0x11   : > { %p64_p2 = scmp.eq.s32.totalorder %s1060_s25, 0  ;;  %p722_p3 = scmp.ge.s32.totalorder %s1060_s25, 2 }
  0x12   : > { %s1340_s0 = smov (%p47_p0, %s45_s0), 0  ;;  %p775_p5 = scmp.lt.s32.totalorder %s1060_s25, 2 }
  0x13   : > { %1320 = sst [smem:[#allocation19_spill]] %s1340_s0  ;;  %p65_p4 = por %p64_p2, %p63_p1 }
  0x14   : > { %s51_s27 = ssub.s32 %s1056_s24, %s1340_s0  ;;  %s1144_s28 = sand.u32 1, %s1048_s22  }
  0x15   : > { %p54_p6 = scmp.eq.s32.totalorder %s51_s27, 0  ;;  %p1146_p7 = pnand %p775_p5, %p65_p4 }
  0x16   : > { %s239_s30 = sand.u32 1, %s1060_s25   ;;  %s1311_s6 = sshll.u32 %s1144_s28, 1 }
  0x17   : > { %s1153_s7 = scalar_select %p54_p6, %s1048_s22, %s56_s26  }
  0x18   : > { %s727_s8 = sshll.u32 %s1056_s24, 1  ;;  %s1323_s2 = sld [smem:[#allocation21_spill]] }
  0x19   : > { %1322 = sst [smem:[#allocation20_spill]] %s1153_s7  ;;  %s243_s12 = scalar_lea.vmem [#allocation7], %s1311_s6 }
  0x1a   : > { %s254_s13 = sshll.u32 %s243_s12, 4  ;;  %s1161_s15 = scalar_lea.sflag [#allocation8], %s239_s30  ;;  %s255_s13 = int_to_ptr.vmem [resolvable:$true] %s254_s13 }
  0x1b   : > { %s1324_s3 = sld [smem:[#allocation22_spill]]  ;;  %s1172_s19 = sadd.s32 4294967295, %s1060_s25  }
  0x1c   : > { %s719_s26 = sadd.s32 4294967294, %s1060_s25   ;;  %p69_p8 = scmp.ne.s32.totalorder %s1044_s21, %s1040_s20 }
  0x1d   : > { %p70_p9 = scmp.eq.s32.totalorder %s1172_s19, 0  ;;  %p176_p10 = scmp.eq.s32.totalorder %s1172_s19, 1 }
  0x1e   : > { %s250_s11 = scalar_lea.hbm %s1323_s2, %s727_s8  ;;  %p182_p11 = scmp.eq.s32.totalorder %s719_s26, 1 }
  0x1f   : > { %s252_s14 = sshll.u32 %s250_s11, 4  ;;  %p720_p12 = scmp.ge.s32.totalorder %s1060_s25, 1  ;;  %s253_s14 = int_to_ptr.hbm [resolvable:$true] %s252_s14 }
  0x20   : > { %766 = dma.hbm_to_vmem [thread:$0]  (!%p1146_p7), %s253_s14, 32, %s255_s13, %s1161_s15  }
  0x21   : > { %s1169_s18 = scalar_lea.hbm %s1324_s3, %s727_s8  ;;  %p1182_p13 = por %p70_p9, %p69_p8 }
  0x22   : > { %p1189_p0 = por %p176_p10, %p63_p1  ;;  %p1193_p2 = por %p182_p11, %p69_p8 }
  0x23   : > { %p189_p4 = scmp.lt.s32.totalorder %s1060_s25, 3  ;;  %s1328_s4 = sld [smem:[#allocation23_spill]] }
  0x24   : > { %s1062_s13 = smov [#allocation10]   ;;  %s723_s16 = sshll.u32 %s1144_s28, 6 }
  0x25   : > { %p1201_p5 = pnand %p720_p12, %p189_p4  ;;  %s203_s14 = sshll.u32 %s1062_s13, 4  ;;  %s204_s14 = int_to_ptr.vmem [resolvable:$true] %s203_s14 }
  0x26   : > { %s743_s17 = sshll.u32 %s1056_s24, 6  ;;  %s218_s26 = scalar_lea.vmem [#allocation4], %s723_s16 }
  0x27   : > { %p756_p1 = pneg %p1201_p5  ;;  %s229_s9 = sshll.u32 %s218_s26, 4  ;;  %s230_s9 = int_to_ptr.vmem [resolvable:$true] %s229_s9 }
  0x28   : > { %s226_s2 = scalar_lea.hbm %s1306_s1, %s743_s17  ;;  %s274_s13 = sshll.u32 %s1169_s18, 4  ;;  %s275_s13 = int_to_ptr.hbm [resolvable:$true] %s274_s13 }
  0x29   : > { %s201_s11 = sshll.u32 %s1328_s4, 4  ;;  %p757_p6 = pnand %p756_p1, %p70_p9  ;;  %s202_s11 = int_to_ptr.hbm [resolvable:$true] %s201_s11 }
  0x2a   : > { %s227_s3 = sshll.u32 %s226_s2, 4  ;;  %s215_s4 = scalar_lea.sflag [#allocation5], %s1144_s28  ;;  %s228_s3 = int_to_ptr.hbm [resolvable:$true] %s227_s3 }
  0x2b   : > { %759 = dma.hbm_to_vmem [thread:$0]  (!%p757_p6), %s202_s11, 128, %s204_s14, [#allocation11]  }
  0x2c   : > { %s1063_s0 = smov 256   ;;  %s1064_s7 = smov 16  }
  0x2d   : > { %763 = dma.hbm_to_vmem [thread:$0]  (!%p1146_p7), %s228_s3, 1024, %s230_s9, %s215_s4, %s1063_s0, %s1063_s0, %s1064_s7  }
  0x2e   : > { %s1330_s24 = sshll.u32 %s1144_s28, 1  ;;  %285 = sbr.rel (%p1201_p5) target bundleno = 247 (0xf7), region = 36 }
  0x2f   : > { %s265_s16 = scalar_lea.vmem [#allocation9], %s1330_s24  ;;  %s1226_s2 = sand.u32 (!%p1201_p5), 1, %s1044_s21  }
  0x30   : > { %s276_s22 = sshll.u32 %s265_s16, 4  ;;  %s731_s6 = sshll.u32 (!%p1201_p5), %s1226_s2, 6  ;;  %s277_s22 = int_to_ptr.vmem [resolvable:$true] %s276_s22 }
  0x31   : > { %769 = dma.hbm_to_vmem [thread:$0]  (!%p1146_p7), %s275_s13, 32, %s277_s22, %s1161_s15  }
  0x32   : > { %s288_s18 = scalar_lea.sflag (!%p1201_p5), [#allocation5], %s1226_s2  ;;  %s291_s11 = scalar_lea.vmem (!%p1201_p5), [#allocation4], %s731_s6 }
  0x33   : > { %1023 = dma.done.wait (%p1182_p13), %s288_s18, 1024  }
  0x34   : > { %1025 = vsyncadd (%p1182_p13), %s288_s18, 4294966272  ;;  %s297_s3 = sand.u32 1, %s1172_s19   ;;  %s1236_s4 = sshll.u32 %s1226_s2, 1 }
  0x35   : > { %s298_s22 = scalar_lea.sflag [#allocation8], %s297_s3  ;;  %s301_s24 = scalar_lea.vmem [#allocation7], %s1236_s4 }
  0x36   : > { %1027 = dma.done.wait (%p1182_p13), %s298_s22, 64  }
  0x37   : > { %1029 = vsyncadd (%p1182_p13), %s298_s22, 4294967232  ;;  %s311_s0 = scalar_lea.vmem [#allocation9], %s1236_s4 }
  0x38   : > { %1031 = dma.done.wait (%p70_p9), [#allocation11], 128  }
  0x39   : > { %1033 = vsyncadd (%p70_p9), [#allocation11], 4294967168  ;;  %v374_v0 = vld [vmem:[%s291_s11 + $0x30] sm:$0xff]  ;;  %v375_v1 = vld [vmem:[%s291_s11 + $0x38] sm:$0xff]  ;;  %vm377_vm0 = vcmask 261120   ;;  %v363_v23 = vlaneseq  ;;  %s1253_s28 = scalar_lea.vmem [#allocation12], %s1236_s4 }
  0x3a   : > { %v372_v2 = vld [vmem:[%s291_s11 + $0x20] sm:$0xff]  ;;  %393 = vmatpush.msra.mxu0 %v374_v0  ;;  %413 = vmatpush.msra.mxu1 %v375_v1  ;;  %v373_v3 = vld [vmem:[%s291_s11 + $0x28] sm:$0xff]  ;;  %v370_v4 = vld [vmem:[%s291_s11 + $0x10] sm:$0xff]  ;;  %v427_v14 = vmul.f32 %v374_v0, %v374_v0  ;;  %v428_v15 = vmul.f32 %v375_v1, %v375_v1  ;;  %v1065_v25 = vmov 0.0   ;;  %s470_s29 = sld [smem:[#allocation3]]  ;;  %s740_s7 = sshll.u32 %s1052_s23, 1 }
  0x3b   : > { %v371_v5 = vld [vmem:[%s291_s11 + $0x18] sm:$0xff]  ;;  %v425_v6 = vmul.f32 %v372_v2, %v372_v2  ;;  %v423_v7 = vmul.f32 %v370_v4, %v370_v4  ;;  %v368_v9 = vld [vmem:[%s291_s11] sm:$0xff]  ;;  %v369_v10 = vld [vmem:[%s291_s11 + $0x8] sm:$0xff]  ;;  %v426_v11 = vmul.f32 %v373_v3, %v373_v3  ;;  %vm1248_vm1 = vcmp.lt.s32.totalorder %v363_v23, 256  ;;  %s568_s27 = scalar_lea.hbm %s1310_s5, %s740_s7  ;;  %s570_s12 = sshll.u32 %s1253_s28, 4  ;;  %s571_s12 = int_to_ptr.vmem [resolvable:$true] %s570_s12 }
  0x3c   : > { %v424_v8 = vmul.f32 %v371_v5, %v371_v5  ;;  %394 = vmatpush.msra.mxu0 %v372_v2  ;;  %414 = vmatpush.msra.mxu1 %v373_v3  ;;  %v421_v12 = vmul.f32 %v368_v9, %v368_v9  ;;  %v422_v13 = vmul.f32 %v369_v10, %v369_v10  ;;  %v376_v18 = vld [vmem:[#allocation10] sm:$0xff]  ;;  %v469_v49 = vld [vmem:[%s311_s0] sm:$0x3]  ;;  %v486_v61 = vld [vmem:[%s301_s24] sm:$0x3]  ;;  %v488_v62 = vshrl.u32 %v363_v23, 7 }
  0x3d   : > { %367 = vst.msk [vmem:[%s1253_s28] sm:$0x3] %vm1248_vm1, %v1065_v25  ;;  %v489_v63 = vperm.slane %v486_v61, 0  ;;  %v490_v0 = vperm.slane %v486_v61, 1  ;;  %vm547_vm11 = vcmask 1040384   ;;  %s572_s14 = sshll.u32 %s568_s27, 4  ;;  %s573_s14 = int_to_ptr.hbm [resolvable:$true] %s572_s14 }
  0x3e   : > { %395 = vmatpush.msra.mxu0 %v370_v4  ;;  %415 = vmatpush.msra.mxu1 %v371_v5  ;;  %v429_v16 = vadd.f32 %v423_v7, %v421_v12  ;;  %v438_v17 = vadd.f32 %v424_v8, %v422_v13  ;;  %s557_s23 = scalar_lea.sflag [#allocation6], %s1226_s2  ;;  %s984_s17 = sshra.s32 %s573_s14, 4  ;;  %s985_s17 = int_to_ptr.hbm [resolvable:$true] %s984_s17 }
  0x3f   : > { %vm491_vm9 = vcmp.eq.s32.totalorder %v488_v62, %v489_v63  ;;  %vm492_vm10 = vcmp.eq.s32.totalorder %v488_v62, %v490_v0  ;;  %s986_s26 = scalar_lea.hbm %s985_s17, 2  ;;  %s990_s13 = scalar_lea.hbm %s1310_s5, 4 }
  0x40   : > { %396 = vmatpush.msra.mxu0 %v368_v9  ;;  %v430_v19 = vadd.f32 %v429_v16, %v425_v6  ;;  %416 = vmatpush.msra.mxu1 %v369_v10  ;;  %v439_v20 = vadd.f32 %v438_v17, %v426_v11  ;;  %v471_v50 = vstv %s470_s29  ;;  %p987_p7 = scmp.ne.s32.totalorder %s985_s17, %s986_s26  ;;  %p991_p10 = scmp.lt.s32.totalorder %s985_s17, %s1310_s5 }
  0x41   : > { %736 = vmatmul.msk.f32.vlgmr.msra.gmra.mxu0 %vm377_vm0, %v376_v18  ;;  %737 = vmatmul.msk.f32.vlgmr.msra.gmra.mxu1 %vm377_vm0, %v376_v18  ;;  %vm472_vm2 = vcmp.le.f32.partialorder %v469_v49, %v471_v50  ;;  %p992_p11 = scmp.lt.s32.totalorder %s990_s13, %s986_s26 }
  0x42   : > { %v431_v21 = vadd.f32 %v430_v19, %v427_v14  ;;  %v440_v22 = vadd.f32 %v439_v20, %v428_v15  ;;  %v738_v53 = vsel %vm472_vm2, 1.0, %v1065_v25  ;;  %p988_p8 = pnand %p987_p7, %p1189_p0 }
  0x43   : > { %v476_v54 = vperm.slane %v738_v53, 0  ;;  %v477_v57 = vperm.slane %v738_v53, 1  ;;  %p993_p12 = por %p992_p11, %p991_p10 }
  0x44   : > { %v432_v26 = vrot.slane %v431_v21, 4  ;;  %v441_v27 = vrot.slane %v440_v22, 4  ;;  %p989_p9 = pneg %p988_p8 }
  0x46   : > { %v433_v28 = vadd.f32 %v432_v26, %v431_v21  ;;  %v442_v29 = vadd.f32 %v441_v27, %v440_v22  ;;  %p994_p13 = pnand %p993_p12, %p989_p9 }
  0x48   : > { %v434_v30 = vrot.slane %v433_v28, 2  ;;  %v443_v31 = vrot.slane %v442_v29, 2 }
  0x4a   : > { %v435_v32 = vadd.f32 %v434_v30, %v433_v28  ;;  %v444_v33 = vadd.f32 %v443_v31, %v442_v29 }
  0x4c   : > { %v436_v34 = vrot.slane %v435_v32, 1  ;;  %v445_v35 = vrot.slane %v444_v33, 1 }
  0x4e   : > { %v437_v36 = vadd.f32 %v436_v34, %v435_v32  ;;  %v446_v37 = vadd.f32 %v445_v35, %v444_v33 }
  0x50   : > { %v447_v38 = vmax.f32 %v437_v36, 1e-24  ;;  %v448_v39 = vmax.f32 %v446_v37, 1e-24 }
  0x52   : > { %830 = vrsqrt.f32 %v447_v38  ;;  %vm455_vm3 = vweird.f32 %v447_v38  ;;  %vm465_vm6 = vweird.f32 %v448_v39 }
  0x53   : > { %832 = vrsqrt.f32 %v448_v39 }
  0x58   : > { %v831_v40 = vpop.eup %830 }
  0x59   : > { %v833_v41 = vpop.eup %832  ;;  %v450_v42 = vmul.f32 %v831_v40, %v447_v38  ;;  %vm456_vm4 = vweird.f32 %v831_v40 }
  0x5a   : > { %v460_v43 = vmul.f32 %v833_v41, %v448_v39  ;;  %vm457_vm5 = vmor %vm455_vm3, %vm456_vm4  ;;  %vm466_vm7 = vweird.f32 %v833_v41 }
  0x5b   : > { %v451_v44 = vmul.f32 %v831_v40, %v450_v42  ;;  %vm467_vm8 = vmor %vm465_vm6, %vm466_vm7 }
  0x5c   : > { %v461_v45 = vmul.f32 %v833_v41, %v460_v43 }
  0x5d   : > { %v452_v46 = vmul.f32 0.5, %v451_v44 }
  0x5e   : > { %v462_v47 = vmul.f32 0.5, %v461_v45 }
  0x5f   : > { %v453_v48 = vsub.f32 1.5, %v452_v46 }
  0x60   : > { %v463_v51 = vsub.f32 1.5, %v462_v47 }
  0x61   : > { %v454_v52 = vmul.f32 %v831_v40, %v453_v48 }
  0x62   : > { %v464_v55 = vmul.f32 %v833_v41, %v463_v51 }
  0x63   : > { %v458_v56 = vsel %vm457_vm5, %v831_v40, %v454_v52 }
  0x64   : > { %v480_v58 = vmul.f32 %v476_v54, %v458_v56  ;;  %v468_v59 = vsel %vm467_vm8, %v833_v41, %v464_v55 }
  0x65   : > { %v481_v60 = vmul.f32 %v477_v57, %v468_v59  ;;  %v543_v59 = vld [vmem:[%s1253_s28] sm:$0x3] }
  0x66   : > { %v482_v1 = vperm.slane %v480_v58, 0 }
  0x67   : > { %v483_v2 = vperm.slane %v481_v60, 0 }
  0xbe   : > { %v398_v3 = vpop.f32.mrf.mxu0  ;;  %v418_v4 = vpop.f32.mrf.mxu1 }
  0xbf   : > { %v484_v5 = vmul.f32 %v482_v1, %v398_v3  ;;  %v485_v6 = vmul.f32 %v483_v2, %v418_v4 }
  0xc1   : > { %v493_v7 = vsel %vm491_vm9, %v484_v5, 0.0  ;;  %v513_v8 = vmul.f32 1.442695, %v484_v5  ;;  %v494_v9 = vsel %vm492_vm10, %v485_v6, 0.0  ;;  %v515_v10 = vmul.f32 1.442695, %v485_v6 }
  0xc2   : > { %v495_v11 = vrot.slane %v493_v7, 4  ;;  %v501_v12 = vrot.slane %v494_v9, 4 }
  0xc3   : > { %834 = vpow2.f32 %v513_v8 }
  0xc4   : > { %v496_v13 = vadd.f32 %v495_v11, %v493_v7  ;;  %v502_v14 = vadd.f32 %v501_v12, %v494_v9  ;;  %836 = vpow2.f32 %v515_v10 }
  0xc6   : > { %v497_v15 = vrot.slane %v496_v13, 2  ;;  %v503_v16 = vrot.slane %v502_v14, 2 }
  0xc8   : > { %v498_v17 = vadd.f32 %v497_v15, %v496_v13  ;;  %v504_v18 = vadd.f32 %v503_v16, %v502_v14 }
  0xc9   : > { %v835_v19 = vpop.eup %834 }
  0xca   : > { %v837_v20 = vpop.eup %836  ;;  %v499_v21 = vrot.slane %v498_v17, 1  ;;  %v517_v22 = vrot.slane %v835_v19, 4  ;;  %v505_v23 = vrot.slane %v504_v18, 1 }
  0xcb   : > { %v523_v25 = vrot.slane %v837_v20, 4 }
  0xcc   : > { %v500_v26 = vadd.f32 %v499_v21, %v498_v17  ;;  %v518_v27 = vadd.f32 %v835_v19, %v517_v22  ;;  %v506_v28 = vadd.f32 %v505_v23, %v504_v18 }
  0xcd   : > { %v524_v29 = vadd.f32 %v837_v20, %v523_v25 }
  0xce   : > { %v519_v30 = vrot.slane %v518_v27, 2  ;;  %v507_v32 = vmul.f32 10.0, %v500_v26  ;;  %v508_v34 = vmul.f32 10.0, %v506_v28 }
  0xcf   : > { %v525_v31 = vrot.slane %v524_v29, 2 }
  0xd0   : > { %v520_v33 = vadd.f32 %v519_v30, %v518_v27  ;;  %v509_v38 = vmul.f32 1.442695, %v507_v32  ;;  %v511_v40 = vmul.f32 1.442695, %v508_v34 }
  0xd1   : > { %v526_v35 = vadd.f32 %v525_v31, %v524_v29 }
  0xd2   : > { %v521_v36 = vrot.slane %v520_v33, 1  ;;  %838 = vpow2.f32 %v509_v38 }
  0xd3   : > { %v527_v37 = vrot.slane %v526_v35, 1  ;;  %840 = vpow2.f32 %v511_v40 }
  0xd4   : > { %v522_v39 = vadd.f32 %v521_v36, %v520_v33 }
  0xd5   : > { %v528_v41 = vadd.f32 %v527_v37, %v526_v35 }
  0xd6   : > { %v529_v42 = vmul.f32 10.0, %v522_v39 }
  0xd7   : > { %v530_v43 = vmul.f32 10.0, %v528_v41 }
  0xd8   : > { %v531_v44 = vadd.f32 1e-07, %v529_v42  ;;  %v839_v46 = vpop.eup %838 }
  0xd9   : > { %v532_v45 = vadd.f32 1e-07, %v530_v43  ;;  %v841_v47 = vpop.eup %840 }
  0xda   : > { %842 = vrcp.f32 %v531_v44 }
  0xdb   : > { %844 = vrcp.f32 %v532_v45 }
  0xe0   : > { %v843_v48 = vpop.eup %842 }
  0xe1   : > { %v845_v49 = vpop.eup %844  ;;  %v535_v50 = vmul.f32 %v843_v48, %v839_v46 }
  0xe2   : > { %v536_v51 = vmul.f32 %v845_v49, %v841_v47 }
  0xe3   : > { %v537_v52 = vadd.f32 1e-07, %v535_v50 }
  0xe4   : > { %v538_v53 = vadd.f32 1e-07, %v536_v51 }
  0xe5   : > { %846 = vlog2.f32 %v537_v52 }
  0xe6   : > { %848 = vlog2.f32 %v538_v53 }
  0xeb   : > { %v847_v54 = vpop.eup %846 }
  0xec   : > { %v849_v55 = vpop.eup %848  ;;  %v540_v57 = vmul.f32 0.6931472, %v847_v54 }
  0xed   : > { %v542_v56 = vmul.f32 0.6931472, %v849_v55 }
  0xef   : > { %v546_v58 = vrot.slane %v542_v56, 7 }
  0xf1   : > { %v548_v60 = vsel %vm547_vm11, %v540_v57, %v546_v58 }
  0xf2   : > { %v550_v61 = vadd.f32 %v548_v60, %v543_v59 }
  0xf4   : > { %555 = vst.msk [vmem:[%s1253_s28] sm:$0x3] %vm1248_vm1, %v550_v61 }
  0xf5   : > { %997 = shalt.err (!%p994_p13)
}
  0xf6   : > { %754 = dma.vmem_to_hbm [thread:$0]  (%p1189_p0), %s571_s12, 32, %s573_s14, %s557_s23  }
  0xf7 PF: > { %s584_s2 = sand.u32 1, %s1040_s20   ;;  %p771_p4 = pnand %p722_p3, %p1193_p2 }
  0xf8   : > { %s585_s18 = scalar_lea.sflag [#allocation6], %s584_s2 }
  0xf9   : > { %p772_p5 = pneg %p771_p4 }
  0xfb   : > { %1035 = dma.done.wait (%p772_p5), %s585_s18, 32  }
  0xfc   : > { %1037 = vsyncadd (%p772_p5), %s585_s18, 4294967264  ;;  %s26_s25 = sadd.s32 1, %s1060_s25   ;;  %s1333_s11 = sld [smem:[#allocation17_spill]] }
  0xfd   : > { %p23_p1 = scmp.ge.s32.totalorder %s26_s25, 4   ;;  %s1334_s22 = sld [smem:[#allocation20_spill]] }
  0xfe   : > { %s1335_s23 = sld [smem:[#allocation18_spill]]  ;;  %s1337_s20 = smov %s1044_s21 }
  0xff   : > { %s1336_s24 = sld [smem:[#allocation19_spill]]  ;;  %25 = sbr.rel (!%p23_p1) target bundleno = 14 (0xe), region = 113 }
 0x102   : > { %s1338_s21 = smov %s1333_s11 }
 0x104   :  { %591 = vsyncpa [#allocation5], 1 }
 0x105   :  { %593 = vsyncpa [#allocation5 + $0x1], 1 }
 0x106   :  { %594 = vsyncpa [#allocation8], 1 }
 0x107   :  { %596 = vsyncpa [#allocation8 + $0x1], 1 }
 0x108   :  { %597 = vsyncpa [#allocation11], 1 }
 0x109   :  { %598 = vsyncpa [#allocation6], 1 }
 0x10a   :  { %600 = vsyncpa [#allocation6 + $0x1], 1 }

</bundles_post_ra>
